<compile_context>
chip_gen: v7x
topology: tpu7x:2x2x1
jax: 0.10.0
libtpu: 0.0.40
codegen_flags: <defaults>
</compile_context>

<pallas_src>
import jax
import jax.numpy as jnp
from jax.experimental import pallas as pl
from jax.experimental.pallas import tpu as pltpu


MODALITIES = ('au', 'em', 'hp', 'bp')


def linear_model_kernel(au_ref, em_ref, hp_ref, bp_ref, w1_ref, w2_ref, out_ref):
    # Each modality ref: [B, T, d_mod].  Mean over the time axis (dim=1).
    def time_mean(ref):
        x = ref[...]
        return jnp.sum(x, axis=1) * (1.0 / x.shape[1])        # [B, d_mod]

    m_au = time_mean(au_ref)
    m_em = time_mean(em_ref)
    m_hp = time_mean(hp_ref)
    m_bp = time_mean(bp_ref)

    d0 = m_au.shape[-1]
    d1 = m_em.shape[-1]
    d2 = m_hp.shape[-1]
    d3 = m_bp.shape[-1]
    F = d0 + d1 + d2 + d3            # fea_dim
    H = w1_ref.shape[1]              # fea_dim // 2

    # Layer 1: concat(means) @ W1 + b1, realized as four partial dots against
    # static row-slices of the packed weight (w1_ref is [F+1, H]; last row = b1).
    h = jnp.dot(m_au, w1_ref[0:d0, :], preferred_element_type=jnp.float32)
    h += jnp.dot(m_em, w1_ref[d0:d0 + d1, :], preferred_element_type=jnp.float32)
    h += jnp.dot(m_hp, w1_ref[d0 + d1:d0 + d1 + d2, :], preferred_element_type=jnp.float32)
    h += jnp.dot(m_bp, w1_ref[d0 + d1 + d2:F, :], preferred_element_type=jnp.float32)
    h += w1_ref[F:F + 1, :]                                     # + b1 (broadcast over B)

    # Layer 2: h @ W2 + b2 (w2_ref is [H+1, n_class]; last row = b2).
    out = jnp.dot(h, w2_ref[0:H, :], preferred_element_type=jnp.float32)
    out += w2_ref[H:H + 1, :]                                   # + b2
    out_ref[...] = out.astype(out_ref.dtype)


def pack_params(params):
    """Fold each bias into its weight operand as an extra row.

    Done ONCE at init (and after every parameter update during training), never
    per forward call — the forward wrapper stays a single pallas_call.
    """
    w1_packed = jnp.concatenate([params['w1'], params['b1']], axis=0)   # [F+1, H]
    w2_packed = jnp.concatenate([params['w2'], params['b2']], axis=0)   # [H+1, C]
    return w1_packed, w2_packed


def linear_model_forward(uni_fea, w1_packed, w2_packed):
    """uni_fea: dict with 'au','em','hp','bp' each [B, T, d_mod] float32."""
    au, em, hp, bp = (uni_fea[k] for k in MODALITIES)
    B, T, _ = au.shape
    F = w1_packed.shape[0] - 1
    H = w1_packed.shape[1]
    n_class = w2_packed.shape[1]

    flops = B * T * F + 2.0 * B * F * H + 2.0 * B * H * n_class
    bytes_accessed = 4.0 * (sum(uni_fea[k].size for k in MODALITIES)
                            + w1_packed.size + w2_packed.size + B * n_class)

    vmem = pl.BlockSpec(memory_space=pltpu.MemorySpace.VMEM)
    return pl.pallas_call(
        linear_model_kernel,
        out_shape=jax.ShapeDtypeStruct((B, n_class), jnp.float32),
        in_specs=[vmem] * 6,
        out_specs=vmem,
        cost_estimate=pl.CostEstimate(
            flops=int(flops), transcendentals=0, bytes_accessed=int(bytes_accessed)),
    )(au, em, hp, bp, w1_packed, w2_packed)


def init_params(key, fea_dim, n_class):
    hidden = fea_dim // 2
    k1, k2, k3, k4 = jax.random.split(key, 4)
    # Weights stored as [in, out] (PyTorch Linear weight transposed).
    return {
        'w1': jax.random.normal(k1, (fea_dim, hidden), jnp.float32) * 0.1,
        'b1': jax.random.normal(k2, (1, hidden), jnp.float32) * 0.1,
        'w2': jax.random.normal(k3, (hidden, n_class), jnp.float32) * 0.1,
        'b2': jax.random.normal(k4, (1, n_class), jnp.float32) * 0.1,
    }


def reference_forward(uni_fea, params):
    # Unfused reference: mean -> concat -> Linear -> Linear (matches PyTorch module).
    means = [jnp.mean(uni_fea[t], axis=1) for t in MODALITIES]
    joint = jnp.concatenate(means, axis=-1)
    h = joint @ params['w1'] + params['b1']
    return h @ params['w2'] + params['b2']


if __name__ == "__main__":
    key = jax.random.PRNGKey(0)
    B, T = 2, 8
    d_mods = {'au': 8, 'em': 8, 'hp': 8, 'bp': 8}
    fea_dim = sum(d_mods.values())   # 32
    n_class = 4

    keys = jax.random.split(key, 5)
    uni_fea = {
        name: jax.random.normal(keys[i], (B, T, d), jnp.float32)
        for i, (name, d) in enumerate(d_mods.items())
    }
    params = init_params(keys[4], fea_dim, n_class)

    # Bias packing happens once here (param-prep time), not per forward call.
    w1_packed, w2_packed = pack_params(params)

    fwd = jax.jit(linear_model_forward)
    out = fwd(uni_fea, w1_packed, w2_packed)
    out = jax.block_until_ready(out)

    ref = reference_forward(uni_fea, params)
    assert out.shape == (B, n_class)
    # Only difference vs reference: the layer-1 reduction is grouped into four
    # K=8 partial sums instead of one K=32 sum; tolerance comfortably covers it.
    assert jnp.allclose(out, ref, atol=1e-5, rtol=1e-5), "mismatch vs JAX reference"

    print("KERNEL_OK")
</pallas_src>

<mosaic_0001>
module attributes {stable_mosaic.version = 11 : i64} {
  func.func @linear_model_kernel(%arg0: memref<2x8x8xf32, #tpu.memory_space<vmem>>, %arg1: memref<2x8x8xf32, #tpu.memory_space<vmem>>, %arg2: memref<2x8x8xf32, #tpu.memory_space<vmem>>, %arg3: memref<2x8x8xf32, #tpu.memory_space<vmem>>, %arg4: memref<33x16xf32, #tpu.memory_space<vmem>>, %arg5: memref<17x4xf32, #tpu.memory_space<vmem>>, %arg6: memref<2x4xf32, #tpu.memory_space<vmem>>) attributes {dimension_semantics = [], scalar_prefetch = 0 : i64, scratch_operands = 0 : i64, tpu.core_type = #tpu.core_type<tc>} {
    %c0 = arith.constant 0 : index
    %c0_0 = arith.constant 0 : index
    %c0_1 = arith.constant 0 : index
    %0 = vector.load %arg0[%c0, %c0_0, %c0_1] : memref<2x8x8xf32, #tpu.memory_space<vmem>>, vector<2x8x8xf32>
    %cst = arith.constant dense<0.000000e+00> : vector<2x8xf32>
    %1 = vector.multi_reduction <add>, %0, %cst [1] : vector<2x8x8xf32> to vector<2x8xf32>
    %cst_2 = arith.constant 1.250000e-01 : f32
    %2 = vector.broadcast %cst_2 : f32 to vector<2x8xf32>
    %3 = arith.mulf %1, %2 : vector<2x8xf32>
    %c0_3 = arith.constant 0 : index
    %c0_4 = arith.constant 0 : index
    %c0_5 = arith.constant 0 : index
    %4 = vector.load %arg1[%c0_3, %c0_4, %c0_5] : memref<2x8x8xf32, #tpu.memory_space<vmem>>, vector<2x8x8xf32>
    %cst_6 = arith.constant dense<0.000000e+00> : vector<2x8xf32>
    %5 = vector.multi_reduction <add>, %4, %cst_6 [1] : vector<2x8x8xf32> to vector<2x8xf32>
    %cst_7 = arith.constant 1.250000e-01 : f32
    %6 = vector.broadcast %cst_7 : f32 to vector<2x8xf32>
    %7 = arith.mulf %5, %6 : vector<2x8xf32>
    %c0_8 = arith.constant 0 : index
    %c0_9 = arith.constant 0 : index
    %c0_10 = arith.constant 0 : index
    %8 = vector.load %arg2[%c0_8, %c0_9, %c0_10] : memref<2x8x8xf32, #tpu.memory_space<vmem>>, vector<2x8x8xf32>
    %cst_11 = arith.constant dense<0.000000e+00> : vector<2x8xf32>
    %9 = vector.multi_reduction <add>, %8, %cst_11 [1] : vector<2x8x8xf32> to vector<2x8xf32>
    %cst_12 = arith.constant 1.250000e-01 : f32
    %10 = vector.broadcast %cst_12 : f32 to vector<2x8xf32>
    %11 = arith.mulf %9, %10 : vector<2x8xf32>
    %c0_13 = arith.constant 0 : index
    %c0_14 = arith.constant 0 : index
    %c0_15 = arith.constant 0 : index
    %12 = vector.load %arg3[%c0_13, %c0_14, %c0_15] : memref<2x8x8xf32, #tpu.memory_space<vmem>>, vector<2x8x8xf32>
    %cst_16 = arith.constant dense<0.000000e+00> : vector<2x8xf32>
    %13 = vector.multi_reduction <add>, %12, %cst_16 [1] : vector<2x8x8xf32> to vector<2x8xf32>
    %cst_17 = arith.constant 1.250000e-01 : f32
    %14 = vector.broadcast %cst_17 : f32 to vector<2x8xf32>
    %15 = arith.mulf %13, %14 : vector<2x8xf32>
    %c0_18 = arith.constant 0 : index
    %c0_19 = arith.constant 0 : index
    %16 = vector.load %arg4[%c0_18, %c0_19] : memref<33x16xf32, #tpu.memory_space<vmem>>, vector<8x16xf32>
    %cst_20 = arith.constant dense<0.000000e+00> : vector<2x16xf32>
    %17 = tpu.matmul %3, %16, %cst_20 {dimension_numbers = #tpu.dot_dimension_numbers<[1], [0], [0], [1], [0, 0, 1, 1], [], []>} : vector<2x8xf32>, vector<8x16xf32>, vector<2x16xf32> -> vector<2x16xf32>
    %c8 = arith.constant 8 : index
    %c0_21 = arith.constant 0 : index
    %18 = vector.load %arg4[%c8, %c0_21] : memref<33x16xf32, #tpu.memory_space<vmem>>, vector<8x16xf32>
    %cst_22 = arith.constant dense<0.000000e+00> : vector<2x16xf32>
    %19 = tpu.matmul %7, %18, %cst_22 {dimension_numbers = #tpu.dot_dimension_numbers<[1], [0], [0], [1], [0, 0, 1, 1], [], []>} : vector<2x8xf32>, vector<8x16xf32>, vector<2x16xf32> -> vector<2x16xf32>
    %20 = arith.addf %17, %19 : vector<2x16xf32>
    %c16 = arith.constant 16 : index
    %c0_23 = arith.constant 0 : index
    %21 = vector.load %arg4[%c16, %c0_23] : memref<33x16xf32, #tpu.memory_space<vmem>>, vector<8x16xf32>
    %cst_24 = arith.constant dense<0.000000e+00> : vector<2x16xf32>
    %22 = tpu.matmul %11, %21, %cst_24 {dimension_numbers = #tpu.dot_dimension_numbers<[1], [0], [0], [1], [0, 0, 1, 1], [], []>} : vector<2x8xf32>, vector<8x16xf32>, vector<2x16xf32> -> vector<2x16xf32>
    %23 = arith.addf %20, %22 : vector<2x16xf32>
    %c24 = arith.constant 24 : index
    %c0_25 = arith.constant 0 : index
    %24 = vector.load %arg4[%c24, %c0_25] : memref<33x16xf32, #tpu.memory_space<vmem>>, vector<8x16xf32>
    %cst_26 = arith.constant dense<0.000000e+00> : vector<2x16xf32>
    %25 = tpu.matmul %15, %24, %cst_26 {dimension_numbers = #tpu.dot_dimension_numbers<[1], [0], [0], [1], [0, 0, 1, 1], [], []>} : vector<2x8xf32>, vector<8x16xf32>, vector<2x16xf32> -> vector<2x16xf32>
    %26 = arith.addf %23, %25 : vector<2x16xf32>
    %c32 = arith.constant 32 : index
    %c0_27 = arith.constant 0 : index
    %27 = vector.load %arg4[%c32, %c0_27] : memref<33x16xf32, #tpu.memory_space<vmem>>, vector<1x16xf32>
    %28 = vector.broadcast %27 : vector<1x16xf32> to vector<2x16xf32>
    %29 = arith.addf %26, %28 : vector<2x16xf32>
    %c0_28 = arith.constant 0 : index
    %c0_29 = arith.constant 0 : index
    %30 = vector.load %arg5[%c0_28, %c0_29] : memref<17x4xf32, #tpu.memory_space<vmem>>, vector<16x4xf32>
    %cst_30 = arith.constant dense<0.000000e+00> : vector<2x4xf32>
    %31 = tpu.matmul %29, %30, %cst_30 {dimension_numbers = #tpu.dot_dimension_numbers<[1], [0], [0], [1], [0, 0, 1, 1], [], []>} : vector<2x16xf32>, vector<16x4xf32>, vector<2x4xf32> -> vector<2x4xf32>
    %c16_31 = arith.constant 16 : index
    %c0_32 = arith.constant 0 : index
    %32 = vector.load %arg5[%c16_31, %c0_32] : memref<17x4xf32, #tpu.memory_space<vmem>>, vector<1x4xf32>
    %33 = vector.broadcast %32 : vector<1x4xf32> to vector<2x4xf32>
    %34 = arith.addf %31, %33 : vector<2x4xf32>
    %c0_33 = arith.constant 0 : index
    %c0_34 = arith.constant 0 : index
    %35 = vector.load %arg6[%c0_33, %c0_34] : memref<2x4xf32, #tpu.memory_space<vmem>>, vector<2x4xf32>
    tpu.vector_store %arg6[%c0_33, %c0_34], %34 {strides = array<i32>} : memref<2x4xf32, #tpu.memory_space<vmem>>, vector<2x4xf32>,
    return
  }
}

</mosaic_0001>

<bundles_post_ra>
// kernel: linear_model_forward.1
= control target key start
LH: loop header
LB: loop body
LE: loop exit
PB: predicated region body
PF: predicated region fallthrough
CT: control target
= control target key end

     0   :  { %vm26_vm0 = vcmask 64512   ;;  %v583_v3 = vmov 0.0   ;;  %vm584_vm1 = vmmov 0   ;;  %s712_s0 = inlined_call_operand.vmem [shape: f32[2,8,8], index: 0, kind: input, shape index: {}]   ;;  %s713_s1 = inlined_call_operand.vmem [shape: f32[2,8,8], index: 1, kind: input, shape index: {}]   ;;  %s714_s2 = inlined_call_operand.vmem [shape: f32[2,8,8], index: 2, kind: input, shape index: {}]   ;;  %s715_s3 = inlined_call_operand.vmem [shape: f32[2,8,8], index: 3, kind: input, shape index: {}]   ;;  %s716_s4 = inlined_call_operand.vmem [shape: f32[33,16], index: 4, kind: input, shape index: {}]   ;;  %s717_s5 = inlined_call_operand.vmem [shape: f32[17,4], index: 5, kind: input, shape index: {}]   ;;  %s718_s6 = inlined_call_operand.hbm [shape: f32[2,4], index: 6, kind: output, shape index: {}]  }
   0x1   :  { %v98_v0 = vld [vmem:[%s716_s4 + $0x8] sm:$0xff]  ;;  %v97_v1 = vld [vmem:[%s716_s4] sm:$0xff]  ;;  %525 = vmatprep.subr.mxu0 %v583_v3  ;;  %530 = vmatprep.subr.mxu1 %v583_v3 }
   0x2   :  { %v43_v2 = vld [vmem:[%s713_s1] sm:$0xff]  ;;  %v44_v4 = vld [vmem:[%s713_s1 + $0x8] sm:$0xff]  ;;  %526 = vmatpush3.msra.mxu0 %v98_v0  ;;  %527 = vmatprep.mubr.msk.f32.mxu0 %vm584_vm1, %v583_v3 }
   0x3   :  { %v45_v5 = vsel %vm26_vm0, %v43_v2, 0.0  ;;  %v24_v6 = vld [vmem:[%s712_s0] sm:$0xff]  ;;  %v25_v7 = vld [vmem:[%s712_s0 + $0x8] sm:$0xff]  ;;  %v52_v9 = vsel %vm26_vm0, %v44_v4, 0.0  ;;  %531 = vmatpush3.msra.mxu1 %v97_v1  ;;  %532 = vmatprep.mubr.msk.f32.mxu1 %vm584_vm1, %v583_v3 }
   0x4   :  { %v46_v8 = vrot.slane %v45_v5, 4  ;;  %v27_v10 = vsel %vm26_vm0, %v24_v6, 0.0  ;;  %v34_v11 = vsel %vm26_vm0, %v25_v7, 0.0  ;;  %v53_v12 = vrot.slane %v52_v9, 4  ;;  %v61_v15 = vld [vmem:[%s714_s2] sm:$0xff]  ;;  %v62_v16 = vld [vmem:[%s714_s2 + $0x8] sm:$0xff]  ;;  %535 = vmatprep.subr.mxu0 %v583_v3  ;;  %540 = vmatprep.subr.mxu1 %v583_v3 }
   0x5   :  { %v28_v13 = vrot.slane %v27_v10, 4  ;;  %v35_v14 = vrot.slane %v34_v11, 4  ;;  %v79_v17 = vld [vmem:[%s715_s3] sm:$0xff]  ;;  %v63_v19 = vsel %vm26_vm0, %v61_v15, 0.0  ;;  %v70_v20 = vsel %vm26_vm0, %v62_v16, 0.0  ;;  %v80_v21 = vld [vmem:[%s715_s3 + $0x8] sm:$0xff] }
   0x6   :  { %v47_v18 = vadd.f32 %v46_v8, %v45_v5  ;;  %v81_v22 = vsel %vm26_vm0, %v79_v17, 0.0 }
   0x7   :  { %11 = vsyncpa [#allocation3], 0  ;;  %v54_v23 = vadd.f32 %v53_v12, %v52_v9  ;;  %v29_v24 = vadd.f32 %v28_v13, %v27_v10  ;;  %v36_v25 = vadd.f32 %v35_v14, %v34_v11  ;;  %v64_v26 = vrot.slane %v63_v19, 4  ;;  %v250_v4 = vld [vmem:[%s716_s4 + $0x10] sm:$0xff]  ;;  %v327_v5 = vld [vmem:[%s716_s4 + $0x18] sm:$0xff]  ;;  %s586_s25 = smov [#allocation2]  }
   0x8   :  { %v48_v27 = vrot.slane %v47_v18, 2  ;;  %vm101_vm2 = vcmask 1041409   ;;  %v71_v28 = vrot.slane %v70_v20, 4  ;;  %v82_v29 = vrot.slane %v81_v22, 4  ;;  %s499_s26 = sshll.u32 %s586_s25, 4  ;;  %s500_s26 = int_to_ptr.vmem [resolvable:$true] %s499_s26 }
   0x9   :  { %v88_v30 = vsel %vm26_vm0, %v80_v21, 0.0  ;;  %v55_v31 = vrot.slane %v54_v23, 2  ;;  %v30_v32 = vrot.slane %v29_v24, 2  ;;  %v37_v33 = vrot.slane %v36_v25, 2  ;;  %s559_s27 = scalar_lea.vmem %s500_s26, 32  ;;  %p564_p1 = scmp.lt.s32.totalorder %s500_s26, %s500_s26 }
   0xa   :  { %v65_v34 = vadd.f32 %v64_v26, %v63_v19  ;;  %v49_v35 = vadd.f32 %v48_v27, %v47_v18  ;;  %v72_v36 = vadd.f32 %v71_v28, %v70_v20  ;;  %v83_v37 = vadd.f32 %v82_v29, %v81_v22  ;;  %v410_v18 = vld [vmem:[%s717_s5] sm:$0xff]  ;;  %v411_v19 = vld [vmem:[%s717_s5 + $0x8] sm:$0xff]  ;;  %p560_p0 = scmp.ne.s32.totalorder %s500_s26, %s559_s27  ;;  %p565_p2 = scmp.lt.s32.totalorder %s559_s27, %s559_s27 }
   0xb   :  { %v89_v38 = vrot.slane %v88_v30, 4  ;;  %v56_v39 = vadd.f32 %v55_v31, %v54_v23  ;;  %v31_v40 = vadd.f32 %v30_v32, %v29_v24  ;;  %v38_v41 = vadd.f32 %v37_v33, %v36_v25 }
   0xc   :  { %v66_v42 = vrot.slane %v65_v34, 2  ;;  %v50_v43 = vrot.slane %v49_v35, 1  ;;  %v73_v44 = vrot.slane %v72_v36, 2  ;;  %v84_v45 = vrot.slane %v83_v37, 2  ;;  %p566_p3 = por %p565_p2, %p564_p1 }
   0xd   :  { %v90_v46 = vadd.f32 %v89_v38, %v88_v30  ;;  %v57_v47 = vrot.slane %v56_v39, 1  ;;  %v32_v48 = vrot.slane %v31_v40, 1  ;;  %v39_v49 = vrot.slane %v38_v41, 1  ;;  %v511_v30 = vld [vmem:[%s716_s4 + $0x20] ss:$0 sm:$0xff] }
   0xe   :  { %v67_v50 = vadd.f32 %v66_v42, %v65_v34  ;;  %v51_v51 = vadd.f32 %v50_v43, %v49_v35  ;;  %v74_v52 = vadd.f32 %v73_v44, %v72_v36  ;;  %v85_v53 = vadd.f32 %v84_v45, %v83_v37  ;;  %v512_v34 = vld [vmem:[%s717_s5 + $0x10] ss:$0 sm:$0xff]  ;;  %p567_p4 = pnand %p566_p3, %p560_p0 }
   0xf   :  { %v91_v54 = vrot.slane %v90_v46, 2  ;;  %v58_v55 = vadd.f32 %v57_v47, %v56_v39  ;;  %v33_v56 = vadd.f32 %v32_v48, %v31_v40  ;;  %v40_v57 = vadd.f32 %v39_v49, %v38_v41 }
  0x10   :  { %v68_v58 = vrot.slane %v67_v50, 1  ;;  %v59_v59 = vmul.f32 0.125, %v51_v51  ;;  %v75_v60 = vrot.slane %v74_v52, 1  ;;  %v86_v61 = vrot.slane %v85_v53, 1 }
  0x11   :  { %v92_v62 = vadd.f32 %v91_v54, %v90_v46  ;;  %v60_v63 = vmul.f32 0.125, %v58_v55  ;;  %v41_v0 = vmul.f32 0.125, %v33_v56  ;;  %v42_v1 = vmul.f32 0.125, %v40_v57 }
  0x12   :  { %v69_v2 = vadd.f32 %v68_v58, %v67_v50  ;;  %v76_v6 = vadd.f32 %v75_v60, %v74_v52  ;;  %v87_v7 = vadd.f32 %v86_v61, %v85_v53  ;;  %v553_v20 = vpack.c.bf16 %v411_v19, %v410_v18 }
  0x13   :  { %v93_v8 = vrot.slane %v92_v62, 1  ;;  %v102_v9 = vsel %vm101_vm2, %v60_v63, %v59_v59  ;;  %v177_v10 = vsel %vm101_vm2, %v42_v1, %v41_v0  ;;  %v585_v21 = vmov 0.0|0.0  }
  0x14   :  { %v77_v11 = vmul.f32 0.125, %v69_v2  ;;  %528 = vmatmul.mubr.msk.f32.vlgmr.msra.gmra.mrb[0].mxu0 %vm26_vm0, %v102_v9  ;;  %533 = vmatmul.mubr.msk.f32.vlgmr.msra.gmra.mrb[0].mxu1 %vm26_vm0, %v177_v10  ;;  %v78_v12 = vmul.f32 0.125, %v76_v6  ;;  %v95_v14 = vmul.f32 0.125, %v87_v7  ;;  %vm417_vm3 = vcmask 130048  }
  0x15   :  { %v94_v13 = vadd.f32 %v93_v8, %v92_v62  ;;  %536 = vmatpush3.msra.mxu0 %v250_v4  ;;  %541 = vmatpush3.msra.mxu1 %v327_v5  ;;  %vm491_vm4 = vcmask 25600  }
  0x16   :  { %537 = vmatprep.mubr.msk.f32.mxu0 %vm584_vm1, %v583_v3  ;;  %v253_v15 = vsel %vm101_vm2, %v78_v12, %v77_v11  ;;  %542 = vmatprep.mubr.msk.f32.mxu1 %vm584_vm1, %v583_v3 }
  0x17   :  { %v96_v16 = vmul.f32 0.125, %v94_v13  ;;  %552 = vmatprep.subr.bf16.mxu0 %v585_v21 }
  0x18   :  { %538 = vmatmul.mubr.msk.f32.vlgmr.msra.gmra.mrb[2].mxu0 %vm26_vm0, %v253_v15 }
  0x19   :  { %v330_v17 = vsel %vm101_vm2, %v96_v16, %v95_v14  ;;  %549 = vmatprep.mubr.msk.f32.mxu0 %vm584_vm1, %v583_v3  ;;  %554 = vmatpush3.bf16.msra.mxu0 %v553_v20 }
  0x1a   :  { %543 = vmatmul.mubr.msk.f32.vlgmr.msra.gmra.mrb[2].mxu1 %vm26_vm0, %v330_v17 }
  0xe7   :  { %v171_v22 = vpop.f32.mrb[0].mxu0  ;;  %v246_v23 = vpop.f32.mrb[0].mxu1 }
  0xe8   :  { %v247_v24 = vadd.f32 %v246_v23, %v171_v22  ;;  %v529_v25 = vpop.f32.mrb[1].mxu0  ;;  %v534_v26 = vpop.f32.mrb[1].mxu1 }
  0xeb   :  { %v322_v27 = vpop.f32.mrb[2].mxu0 }
  0xec   :  { %v326_v28 = vadd.f32 %v322_v27, %v247_v24  ;;  %v539_v3 = vpop.f32.mrb[3].mxu0 }
  0xed   :  { %v399_v29 = vpop.f32.mrb[2].mxu1 }
  0xee   :  { %v544_v31 = vpop.f32.mrb[3].mxu1  ;;  %v403_v32 = vadd.f32 %v399_v29, %v326_v28 }
  0xf0   :  { %v409_v33 = vadd.f32 %v511_v30, %v403_v32 }
  0xf2   :  { %550 = vmatmul.mubr.msk.f32.vlgmr.msra.gmra.mrb[4].mxu0 %vm417_vm3, %v409_v33 }
 0x1c5   :  { %v487_v35 = vpop.f32.mrb[4].mxu0 }
 0x1c6   :  { %v488_v36 = vadd.f32 %v512_v34, %v487_v35  ;;  %v551_v37 = vpop.f32.mrb[5].mxu0 }
 0x1c8   :  { %492 = vst.msk [vmem:[#allocation2] sm:$0x3] %vm491_vm4, %v488_v36 }
 0x1c9   :  { %570 = shalt.err (!%p567_p4)
}
 0x1ca   :  { %s571_s29 = scalar_lea.hbm %s718_s6, 32 }
 0x1cb   :  { %p572_p5 = scmp.ne.s32.totalorder %s718_s6, %s571_s29  ;;  %p575_p6 = scmp.lt.u32.totalorder %s571_s29, %s718_s6 }
 0x1cd   :  { %p577_p7 = pnand %p575_p6, %p572_p5 }
 0x1cf   :  { %580 = shalt.err (!%p577_p7)
}
 0x1d0   :  { %502 = dma.vmem_to_hbm [thread:$0]  %s500_s26, 32, %s718_s6, [#allocation3]  }
 0x1d1   :  { %581 = dma.done.wait [#allocation3], 32  }
 0x1d2   :  { %582 = vsyncadd [#allocation3], 4294967264 }
 0x1d3   :  { %506 = vsyncpa [#allocation3], 1 }

</bundles_post_ra>
